<compile_context>
chip_gen: v7x
topology: tpu7x:2x2x1
jax: 0.10.0
libtpu: 0.0.40
codegen_flags: <defaults>
</compile_context>

<pallas_src>
import functools

import jax
import jax.numpy as jnp
from jax.experimental import pallas as pl
from jax.experimental.pallas import tpu as pltpu

INP = 784        # 28*28, fixed by x.view((-1, 784))
HID1 = 256
HID2 = 128
OUT = 10
OUT_PAD = 16     # final layer padded to 16 lanes (zero weights, -1e30 bias)


def _round_up(n, m):
    return (n + m - 1) // m * m


def _round_down(n, m):
    return n // m * m


def _mlp_kernel(x_ref, w1_ref, b1_ref, w2_ref, b2_ref, w3_ref, b3_ref,
                w4_ref, b4_ref, o_ref):
    # Cast x to bf16 in-kernel (VPU has huge slack); HBM only carries the
    # original f32 once instead of an extra wrapper-side bf16 copy pass.
    x = x_ref[...].astype(jnp.bfloat16)
    # Layer 1: (bt, 784) @ (784, 256) + (1, 256), ReLU  (bf16 MXU, f32 acc)
    h = jnp.dot(x, w1_ref[...], preferred_element_type=jnp.float32)
    h = jnp.maximum(h + b1_ref[...], 0.0).astype(jnp.bfloat16)
    # Layer 2: (bt, 256) @ (256, 128) + (1, 128), ReLU
    h = jnp.dot(h, w2_ref[...], preferred_element_type=jnp.float32)
    h = jnp.maximum(h + b2_ref[...], 0.0).astype(jnp.bfloat16)
    # Layer 3: (bt, 128) @ (128, 128) + (1, 128), ReLU
    h = jnp.dot(h, w3_ref[...], preferred_element_type=jnp.float32)
    h = jnp.maximum(h + b3_ref[...], 0.0).astype(jnp.bfloat16)
    # Output layer, padded 10 -> 16 lanes: padded lanes have zero weight
    # columns and bias = -1e30, so exp() -> 0 and they contribute nothing to
    # the softmax denominator.
    logits = jnp.dot(h, w4_ref[...], preferred_element_type=jnp.float32) + b4_ref[...]
    # Softmax over the feature (last) axis -- matches F.softmax for 2-D input.
    m = jnp.max(logits, axis=-1, keepdims=True)
    e = jnp.exp(logits - m)
    inv_denom = pl.reciprocal(jnp.sum(e, axis=-1, keepdims=True), approx=True)
    o_ref[...] = (e * inv_denom).astype(o_ref.dtype)


@functools.partial(jax.jit, static_argnames=("batch_tile",))
def mlp_forward(x, params, *, batch_tile=2048):
    """x: any shape that flattens to (-1, 784); returns (B, OUT) softmax probs."""
    x2 = x.reshape(-1, INP)            # keep original dtype; cast happens in-kernel
    B = x2.shape[0]

    batch_tile = max(_round_down(int(batch_tile), 16), 16)

    if B < 16:
        # Tiny batch: pad to one 16-row tile (negligible copy).
        x2 = jnp.pad(x2, ((0, 16 - B), (0, 0)))
        Bk, bt = 16, 16
    else:
        # No whole-array pad: Pallas handles the ragged last block
        # (OOB reads are unused rows, OOB writes are dropped).
        Bk = B
        if Bk >= 512:
            # Large batch: big tiles to amortize per-step overhead, but keep
            # >= 2 grid steps so both v7x TensorCores get work.
            half = _round_up(-(-Bk // 2), 16)
            bt = min(batch_tile, half)
        else:
            bt = min(batch_tile, _round_down(Bk, 16))
    grid = -(-Bk // bt)

    w1, b1, w2, b2, w3, b3, w4, b4 = params

    full = lambda shape: pl.BlockSpec(shape, lambda i: (0, 0))

    out_padded = pl.pallas_call(
        _mlp_kernel,
        out_shape=jax.ShapeDtypeStruct((Bk, OUT_PAD), jnp.float32),
        grid_spec=pltpu.PrefetchScalarGridSpec(
            num_scalar_prefetch=0,
            grid=(grid,),
            in_specs=[
                pl.BlockSpec((bt, INP), lambda i: (i, 0)),   # x tile
                full((INP, HID1)), full((1, HID1)),          # l1
                full((HID1, HID2)), full((1, HID2)),         # h1
                full((HID2, HID2)), full((1, HID2)),         # h2
                full((HID2, OUT_PAD)), full((1, OUT_PAD)),   # l2 (lane-padded)
            ],
            out_specs=pl.BlockSpec((bt, OUT_PAD), lambda i: (i, 0)),
        ),
        compiler_params=pltpu.CompilerParams(
            dimension_semantics=("parallel",),
            vmem_limit_bytes=48 * 1024 * 1024),   # big tiles also fit v5e's limit
    )(x2, w1, b1, w2, b2, w3, b3, w4, b4)

    # Drop batch padding / ragged tail and the padded softmax lanes (exactly 0).
    return out_padded[:B, :OUT]


def init_params(key):
    """PyTorch-style uniform(-1/sqrt(fan_in), 1/sqrt(fan_in)) init.

    Weights stored as (in_features, out_features) in bf16; biases as
    (1, out_features) in f32. The final layer is padded to OUT_PAD lanes with
    zero weight columns and -1e30 bias so softmax ignores the padded lanes.
    """
    dims = [(INP, HID1), (HID1, HID2), (HID2, HID2), (HID2, OUT)]
    params = []
    for li, (fan_in, fan_out) in enumerate(dims):
        key, kw, kb = jax.random.split(key, 3)
        bound = 1.0 / float(fan_in) ** 0.5
        w = jax.random.uniform(kw, (fan_in, fan_out), jnp.float32, -bound, bound)
        b = jax.random.uniform(kb, (1, fan_out), jnp.float32, -bound, bound)
        if li == len(dims) - 1:  # pad output layer to OUT_PAD lanes
            w = jnp.pad(w, ((0, 0), (0, OUT_PAD - OUT)))
            b = jnp.concatenate(
                [b, jnp.full((1, OUT_PAD - OUT), -1e30, jnp.float32)], axis=1)
        params += [w.astype(jnp.bfloat16), b.astype(jnp.float32)]
    return tuple(params)


if __name__ == "__main__":
    key = jax.random.PRNGKey(0)
    k_x, k_p = jax.random.split(key)

    # Small MNIST-like batch: (batch=8, channels=1, 28, 28) -> flattened to (8, 784).
    x = jax.random.normal(k_x, (8, 1, 28, 28), jnp.float32)
    params = init_params(k_p)

    out = mlp_forward(x, params)
    jax.block_until_ready(out)

    # Sanity: correct shape, finite, softmax rows sum to ~1
    # (bf16 matmuls + approx reciprocal -> loose tolerance).
    row_sums = jnp.sum(out, axis=-1)
    assert out.shape == (8, OUT)
    assert bool(jnp.all(jnp.isfinite(out)))
    assert bool(jnp.all(jnp.abs(row_sums - 1.0) < 1e-2))

    print("KERNEL_OK")
</pallas_src>

<mosaic_0001>
module attributes {stable_mosaic.version = 11 : i64} {
  func.func @_mlp_kernel(%arg0: i32, %arg1: memref<16x784xf32, #tpu.memory_space<vmem>>, %arg2: memref<784x256xbf16, #tpu.memory_space<vmem>>, %arg3: memref<1x256xf32, #tpu.memory_space<vmem>>, %arg4: memref<256x128xbf16, #tpu.memory_space<vmem>>, %arg5: memref<1x128xf32, #tpu.memory_space<vmem>>, %arg6: memref<128x128xbf16, #tpu.memory_space<vmem>>, %arg7: memref<1x128xf32, #tpu.memory_space<vmem>>, %arg8: memref<128x16xbf16, #tpu.memory_space<vmem>>, %arg9: memref<1x16xf32, #tpu.memory_space<vmem>>, %arg10: memref<16x16xf32, #tpu.memory_space<vmem>>) attributes {dimension_semantics = [#tpu.dimension_semantics<parallel>], iteration_bounds = array<i64: 1>, scalar_prefetch = 0 : i64, scratch_operands = 0 : i64, tpu.core_type = #tpu.core_type<tc>, window_params = [{transform_indices = @transform_0, window_bounds = array<i64: 16, 784>}, {pipeline_mode = #tpu.pipeline_mode<synchronous>, transform_indices = @transform_1, window_bounds = array<i64: 784, 256>}, {pipeline_mode = #tpu.pipeline_mode<synchronous>, transform_indices = @transform_2, window_bounds = array<i64: 1, 256>}, {pipeline_mode = #tpu.pipeline_mode<synchronous>, transform_indices = @transform_3, window_bounds = array<i64: 256, 128>}, {pipeline_mode = #tpu.pipeline_mode<synchronous>, transform_indices = @transform_4, window_bounds = array<i64: 1, 128>}, {pipeline_mode = #tpu.pipeline_mode<synchronous>, transform_indices = @transform_5, window_bounds = array<i64: 128, 128>}, {pipeline_mode = #tpu.pipeline_mode<synchronous>, transform_indices = @transform_6, window_bounds = array<i64: 1, 128>}, {pipeline_mode = #tpu.pipeline_mode<synchronous>, transform_indices = @transform_7, window_bounds = array<i64: 128, 16>}, {pipeline_mode = #tpu.pipeline_mode<synchronous>, transform_indices = @transform_8, window_bounds = array<i64: 1, 16>}, {transform_indices = @transform_9, window_bounds = array<i64: 16, 16>}]} {
    %c0 = arith.constant 0 : index
    %c0_0 = arith.constant 0 : index
    %0 = vector.load %arg1[%c0, %c0_0] : memref<16x784xf32, #tpu.memory_space<vmem>>, vector<16x784xf32>
    %1 = arith.truncf %0 : vector<16x784xf32> to vector<16x784xbf16>
    %c0_1 = arith.constant 0 : index
    %c0_2 = arith.constant 0 : index
    %2 = vector.load %arg2[%c0_1, %c0_2] : memref<784x256xbf16, #tpu.memory_space<vmem>>, vector<784x256xbf16>
    %cst = arith.constant dense<0.000000e+00> : vector<16x256xf32>
    %3 = tpu.matmul %1, %2, %cst {dimension_numbers = #tpu.dot_dimension_numbers<[1], [0], [0], [1], [0, 0, 1, 1], [], []>} : vector<16x784xbf16>, vector<784x256xbf16>, vector<16x256xf32> -> vector<16x256xf32>
    %c0_3 = arith.constant 0 : index
    %c0_4 = arith.constant 0 : index
    %4 = vector.load %arg3[%c0_3, %c0_4] : memref<1x256xf32, #tpu.memory_space<vmem>>, vector<1x256xf32>
    %5 = vector.broadcast %4 : vector<1x256xf32> to vector<16x256xf32>
    %6 = arith.addf %3, %5 : vector<16x256xf32>
    %cst_5 = arith.constant 0.000000e+00 : f32
    %7 = vector.broadcast %cst_5 : f32 to vector<16x256xf32>
    %8 = arith.maximumf %6, %7 : vector<16x256xf32>
    %9 = arith.truncf %8 : vector<16x256xf32> to vector<16x256xbf16>
    %c0_6 = arith.constant 0 : index
    %c0_7 = arith.constant 0 : index
    %10 = vector.load %arg4[%c0_6, %c0_7] : memref<256x128xbf16, #tpu.memory_space<vmem>>, vector<256x128xbf16>
    %cst_8 = arith.constant dense<0.000000e+00> : vector<16x128xf32>
    %11 = tpu.matmul %9, %10, %cst_8 {dimension_numbers = #tpu.dot_dimension_numbers<[1], [0], [0], [1], [0, 0, 1, 1], [], []>} : vector<16x256xbf16>, vector<256x128xbf16>, vector<16x128xf32> -> vector<16x128xf32>
    %c0_9 = arith.constant 0 : index
    %c0_10 = arith.constant 0 : index
    %12 = vector.load %arg5[%c0_9, %c0_10] : memref<1x128xf32, #tpu.memory_space<vmem>>, vector<1x128xf32>
    %13 = vector.broadcast %12 : vector<1x128xf32> to vector<16x128xf32>
    %14 = arith.addf %11, %13 : vector<16x128xf32>
    %cst_11 = arith.constant 0.000000e+00 : f32
    %15 = vector.broadcast %cst_11 : f32 to vector<16x128xf32>
    %16 = arith.maximumf %14, %15 : vector<16x128xf32>
    %17 = arith.truncf %16 : vector<16x128xf32> to vector<16x128xbf16>
    %c0_12 = arith.constant 0 : index
    %c0_13 = arith.constant 0 : index
    %18 = vector.load %arg6[%c0_12, %c0_13] : memref<128x128xbf16, #tpu.memory_space<vmem>>, vector<128x128xbf16>
    %cst_14 = arith.constant dense<0.000000e+00> : vector<16x128xf32>
    %19 = tpu.matmul %17, %18, %cst_14 {dimension_numbers = #tpu.dot_dimension_numbers<[1], [0], [0], [1], [0, 0, 1, 1], [], []>} : vector<16x128xbf16>, vector<128x128xbf16>, vector<16x128xf32> -> vector<16x128xf32>
    %c0_15 = arith.constant 0 : index
    %c0_16 = arith.constant 0 : index
    %20 = vector.load %arg7[%c0_15, %c0_16] : memref<1x128xf32, #tpu.memory_space<vmem>>, vector<1x128xf32>
    %21 = vector.broadcast %20 : vector<1x128xf32> to vector<16x128xf32>
    %22 = arith.addf %19, %21 : vector<16x128xf32>
    %cst_17 = arith.constant 0.000000e+00 : f32
    %23 = vector.broadcast %cst_17 : f32 to vector<16x128xf32>
    %24 = arith.maximumf %22, %23 : vector<16x128xf32>
    %25 = arith.truncf %24 : vector<16x128xf32> to vector<16x128xbf16>
    %c0_18 = arith.constant 0 : index
    %c0_19 = arith.constant 0 : index
    %26 = vector.load %arg8[%c0_18, %c0_19] : memref<128x16xbf16, #tpu.memory_space<vmem>>, vector<128x16xbf16>
    %cst_20 = arith.constant dense<0.000000e+00> : vector<16x16xf32>
    %27 = tpu.matmul %25, %26, %cst_20 {dimension_numbers = #tpu.dot_dimension_numbers<[1], [0], [0], [1], [0, 0, 1, 1], [], []>} : vector<16x128xbf16>, vector<128x16xbf16>, vector<16x16xf32> -> vector<16x16xf32>
    %c0_21 = arith.constant 0 : index
    %c0_22 = arith.constant 0 : index
    %28 = vector.load %arg9[%c0_21, %c0_22] : memref<1x16xf32, #tpu.memory_space<vmem>>, vector<1x16xf32>
    %29 = vector.broadcast %28 : vector<1x16xf32> to vector<16x16xf32>
    %30 = arith.addf %27, %29 : vector<16x16xf32>
    %cst_23 = arith.constant dense<0xFF800000> : vector<16xf32>
    %31 = vector.multi_reduction <maximumf>, %30, %cst_23 [1] : vector<16x16xf32> to vector<16xf32>
    %32 = vector.shape_cast %31 : vector<16xf32> to vector<16x1xf32>
    %33 = vector.broadcast %32 : vector<16x1xf32> to vector<16x16xf32>
    %34 = arith.subf %30, %33 : vector<16x16xf32>
    %35 = math.exp %34 : vector<16x16xf32>
    %cst_24 = arith.constant dense<0.000000e+00> : vector<16xf32>
    %36 = vector.multi_reduction <add>, %35, %cst_24 [1] : vector<16x16xf32> to vector<16xf32>
    %37 = vector.shape_cast %36 : vector<16xf32> to vector<16x1xf32>
    %38 = tpu.reciprocal %37 {approx = true} : vector<16x1xf32> -> vector<16x1xf32>
    %39 = vector.broadcast %38 : vector<16x1xf32> to vector<16x16xf32>
    %40 = arith.mulf %35, %39 : vector<16x16xf32>
    %c0_25 = arith.constant 0 : index
    %c0_26 = arith.constant 0 : index
    %41 = vector.load %arg10[%c0_25, %c0_26] : memref<16x16xf32, #tpu.memory_space<vmem>>, vector<16x16xf32>
    tpu.vector_store %arg10[%c0_25, %c0_26], %40 {strides = array<i32>} : memref<16x16xf32, #tpu.memory_space<vmem>>, vector<16x16xf32>,
    return
  }
  func.func @transform_0(%arg0: i32) -> (i32, i32) {
    %c0_i32 = arith.constant 0 : i32
    %c0_i32_0 = arith.constant 0 : i32
    return %arg0, %c0_i32 : i32, i32
  }
  func.func @transform_1(%arg0: i32) -> (i32, i32) {
    %c0_i32 = arith.constant 0 : i32
    %c0_i32_0 = arith.constant 0 : i32
    %c0_i32_1 = arith.constant 0 : i32
    return %c0_i32, %c0_i32_0 : i32, i32
  }
  func.func @transform_2(%arg0: i32) -> (i32, i32) {
    %c0_i32 = arith.constant 0 : i32
    %c0_i32_0 = arith.constant 0 : i32
    %c0_i32_1 = arith.constant 0 : i32
    return %c0_i32, %c0_i32_0 : i32, i32
  }
  func.func @transform_3(%arg0: i32) -> (i32, i32) {
    %c0_i32 = arith.constant 0 : i32
    %c0_i32_0 = arith.constant 0 : i32
    %c0_i32_1 = arith.constant 0 : i32
    return %c0_i32, %c0_i32_0 : i32, i32
  }
  func.func @transform_4(%arg0: i32) -> (i32, i32) {
    %c0_i32 = arith.constant 0 : i32
    %c0_i32_0 = arith.constant 0 : i32
    %c0_i32_1 = arith.constant 0 : i32
    return %c0_i32, %c0_i32_0 : i32, i32
  }
  func.func @transform_5(%arg0: i32) -> (i32, i32) {
    %c0_i32 = arith.constant 0 : i32
    %c0_i32_0 = arith.constant 0 : i32
    %c0_i32_1 = arith.constant 0 : i32
    return %c0_i32, %c0_i32_0 : i32, i32
  }
  func.func @transform_6(%arg0: i32) -> (i32, i32) {
    %c0_i32 = arith.constant 0 : i32
    %c0_i32_0 = arith.constant 0 : i32
    %c0_i32_1 = arith.constant 0 : i32
    return %c0_i32, %c0_i32_0 : i32, i32
  }
  func.func @transform_7(%arg0: i32) -> (i32, i32) {
    %c0_i32 = arith.constant 0 : i32
    %c0_i32_0 = arith.constant 0 : i32
    %c0_i32_1 = arith.constant 0 : i32
    return %c0_i32, %c0_i32_0 : i32, i32
  }
  func.func @transform_8(%arg0: i32) -> (i32, i32) {
    %c0_i32 = arith.constant 0 : i32
    %c0_i32_0 = arith.constant 0 : i32
    %c0_i32_1 = arith.constant 0 : i32
    return %c0_i32, %c0_i32_0 : i32, i32
  }
  func.func @transform_9(%arg0: i32) -> (i32, i32) {
    %c0_i32 = arith.constant 0 : i32
    %c0_i32_0 = arith.constant 0 : i32
    return %arg0, %c0_i32 : i32, i32
  }
}

</mosaic_0001>

<bundles_post_ra>
// kernel: mlp_forward.1
= control target key start
LH: loop header
LB: loop body
LE: loop exit
PB: predicated region body
PF: predicated region fallthrough
CT: control target
= control target key end

     0   :  { %vm654_vm0 = vcmask 130048   ;;  %vm1692_vm1 = vmmov 0   ;;  %s2220_s1 = inlined_call_operand.vmem [shape: bf16[784,256], index: 1, kind: input, shape index: {}]   ;;  %s2221_s0 = inlined_call_operand.vmem [shape: f32[16,784], index: 0, kind: input, shape index: {}]   ;;  %s2222_s3 = inlined_call_operand.vmem [shape: bf16[256,128], index: 3, kind: input, shape index: {}]   ;;  %s2223_s5 = inlined_call_operand.vmem [shape: bf16[128,128], index: 5, kind: input, shape index: {}]   ;;  %s2224_s2 = inlined_call_operand.vmem [shape: f32[1,256], index: 2, kind: input, shape index: {}]   ;;  %s2225_s7 = inlined_call_operand.vmem [shape: bf16[128,16], index: 7, kind: input, shape index: {}]   ;;  %s2226_s4 = inlined_call_operand.vmem [shape: f32[1,128], index: 4, kind: input, shape index: {}]   ;;  %s2227_s6 = inlined_call_operand.vmem [shape: f32[1,128], index: 6, kind: input, shape index: {}]   ;;  %s2228_s8 = inlined_call_operand.vmem [shape: f32[1,16], index: 8, kind: input, shape index: {}]   ;;  %s2229_s9 = inlined_call_operand.vmem [shape: f32[16,16], index: 9, kind: output, shape index: {}]  }
   0x1   :  { %v1503_v0 = vld [vmem:[%s2220_s1 + $0x104] ss:$8 sps:$4 sm:$0xff]   ;;  %v1505_v1 = vld [vmem:[%s2220_s1 + $0x100] ss:$8 sps:$4 sm:$0xff]   ;;  %v1506_v2 = vld [vmem:[%s2220_s1 + $0x114] ss:$8 sps:$4 sm:$0xff]  }
   0x2   :  { %701 = vmatprep.subr.bf16.mxu0 %v1503_v0  ;;  %v1508_v3 = vld [vmem:[%s2220_s1 + $0x110] ss:$8 sps:$4 sm:$0xff]   ;;  %v1509_v4 = vld [vmem:[%s2220_s1 + $0x124] ss:$8 sps:$4 sm:$0xff]   ;;  %v1511_v5 = vld [vmem:[%s2220_s1 + $0x120] ss:$8 sps:$4 sm:$0xff]  }
   0x3   :  { %702 = vmatpush1.bf16.msra.mxu0 %v1505_v1  ;;  %v1512_v6 = vld [vmem:[%s2220_s1 + $0x134] ss:$8 sps:$4 sm:$0xff]   ;;  %v1514_v7 = vld [vmem:[%s2220_s1 + $0x130] ss:$8 sps:$4 sm:$0xff]   ;;  %v1515_v8 = vld [vmem:[%s2220_s1 + $0x144] ss:$8 sps:$4 sm:$0xff]  }
   0x4   :  { %703 = vmatprep.subr.bf16.mxu0 %v1506_v2  ;;  %v1517_v9 = vld [vmem:[%s2220_s1 + $0x140] ss:$8 sps:$4 sm:$0xff]   ;;  %v1518_v10 = vld [vmem:[%s2220_s1 + $0x154] ss:$8 sps:$4 sm:$0xff]   ;;  %v1520_v11 = vld [vmem:[%s2220_s1 + $0x150] ss:$8 sps:$4 sm:$0xff]  }
   0x5   :  { %v1521_v12 = vld [vmem:[%s2220_s1 + $0x164] ss:$8 sps:$4 sm:$0xff]   ;;  %v36_v13 = vld [vmem:[%s2221_s0 + $0x18] sm:$0xff]  ;;  %v43_v14 = vld [vmem:[%s2221_s0 + $0x50] sm:$0xff] }
   0x6   :  { %v50_v15 = vpack.c.bf16 %v43_v14, %v36_v13  ;;  %v1523_v16 = vld [vmem:[%s2220_s1 + $0x160] ss:$8 sps:$4 sm:$0xff]   ;;  %v1524_v17 = vld [vmem:[%s2220_s1 + $0x174] ss:$8 sps:$4 sm:$0xff]   ;;  %v1557_v18 = vld [vmem:[%s2220_s1 + $0x4] ss:$8 sps:$4 sm:$0xff]  }
   0x7   :  { %704 = vmatpush1.bf16.msra.mxu0 %v1508_v3  ;;  %v1526_v19 = vld [vmem:[%s2220_s1 + $0x170] ss:$8 sps:$4 sm:$0xff]   ;;  %v1527_v20 = vld [vmem:[%s2220_s1 + $0x184] ss:$8 sps:$4 sm:$0xff]   ;;  %v1562_v21 = vld [vmem:[%s2220_s1] ss:$8 sps:$4 sm:$0xff]   ;;  %658 = vmatprep.subr.bf16.mxu1 %v1557_v18 }
   0x8   :  { %705 = vmatprep.subr.bf16.mxu0 %v1509_v4  ;;  %733 = vmatprep.mubr.bf16.mxu0 %v50_v15  ;;  %v1563_v22 = vld [vmem:[%s2220_s1 + $0x14] ss:$8 sps:$4 sm:$0xff]   ;;  %v1529_v23 = vld [vmem:[%s2220_s1 + $0x180] ss:$8 sps:$4 sm:$0xff]   ;;  %v1568_v24 = vld [vmem:[%s2220_s1 + $0x10] ss:$8 sps:$4 sm:$0xff]  }
   0x9   :  { %659 = vmatpush1.bf16.msra.mxu1 %v1562_v21  ;;  %v1569_v25 = vld [vmem:[%s2220_s1 + $0x24] ss:$8 sps:$4 sm:$0xff]   ;;  %v1530_v26 = vld [vmem:[%s2220_s1 + $0x194] ss:$8 sps:$4 sm:$0xff]   ;;  %v1574_v27 = vld [vmem:[%s2220_s1 + $0x20] ss:$8 sps:$4 sm:$0xff]  }
   0xa   :  { %660 = vmatprep.subr.bf16.mxu1 %v1563_v22  ;;  %v1575_v28 = vld [vmem:[%s2220_s1 + $0x34] ss:$8 sps:$4 sm:$0xff]   ;;  %v1532_v29 = vld [vmem:[%s2220_s1 + $0x190] ss:$8 sps:$4 sm:$0xff]   ;;  %v1533_v30 = vld [vmem:[%s2220_s1 + $0x1a4] ss:$8 sps:$4 sm:$0xff]  }
   0xb   :  { %706 = vmatpush1.bf16.msra.mxu0 %v1511_v5  ;;  %v1580_v31 = vld [vmem:[%s2220_s1 + $0x30] ss:$8 sps:$4 sm:$0xff]   ;;  %v1581_v32 = vld [vmem:[%s2220_s1 + $0x44] ss:$8 sps:$4 sm:$0xff]   ;;  %v1535_v33 = vld [vmem:[%s2220_s1 + $0x1a0] ss:$8 sps:$4 sm:$0xff]  }
   0xc   :  { %707 = vmatprep.subr.bf16.mxu0 %v1512_v6  ;;  %v1536_v34 = vld [vmem:[%s2220_s1 + $0x1b4] ss:$8 sps:$4 sm:$0xff]   ;;  %v1586_v35 = vld [vmem:[%s2220_s1 + $0x40] ss:$8 sps:$4 sm:$0xff]   ;;  %v1538_v37 = vld [vmem:[%s2220_s1 + $0x1b0] ss:$8 sps:$4 sm:$0xff]  }
   0xd   :  { %661 = vmatpush1.bf16.msra.mxu1 %v1568_v24  ;;  %v1587_v36 = vld [vmem:[%s2220_s1 + $0x54] ss:$8 sps:$4 sm:$0xff]   ;;  %v1539_v38 = vld [vmem:[%s2220_s1 + $0x1c4] ss:$8 sps:$4 sm:$0xff]   ;;  %v1592_v39 = vld [vmem:[%s2220_s1 + $0x50] ss:$8 sps:$4 sm:$0xff]  }
   0xe   :  { %662 = vmatprep.subr.bf16.mxu1 %v1569_v25  ;;  %v1593_v40 = vld [vmem:[%s2220_s1 + $0x64] ss:$8 sps:$4 sm:$0xff]   ;;  %v1541_v41 = vld [vmem:[%s2220_s1 + $0x1c0] ss:$8 sps:$4 sm:$0xff]   ;;  %v1542_v42 = vld [vmem:[%s2220_s1 + $0x1d4] ss:$8 sps:$4 sm:$0xff]  }
   0xf   :  { %708 = vmatpush1.bf16.msra.mxu0 %v1514_v7  ;;  %v1598_v43 = vld [vmem:[%s2220_s1 + $0x60] ss:$8 sps:$4 sm:$0xff]   ;;  %v1599_v44 = vld [vmem:[%s2220_s1 + $0x74] ss:$8 sps:$4 sm:$0xff]   ;;  %v1544_v45 = vld [vmem:[%s2220_s1 + $0x1d0] ss:$8 sps:$4 sm:$0xff]  }
  0x10   :  { %709 = vmatprep.subr.bf16.mxu0 %v1515_v8  ;;  %v1545_v46 = vld [vmem:[%s2220_s1 + $0x1e4] ss:$8 sps:$4 sm:$0xff]   ;;  %v1604_v47 = vld [vmem:[%s2220_s1 + $0x70] ss:$8 sps:$4 sm:$0xff]   ;;  %v1547_v49 = vld [vmem:[%s2220_s1 + $0x1e0] ss:$8 sps:$4 sm:$0xff]  }
  0x11   :  { %663 = vmatpush1.bf16.msra.mxu1 %v1574_v27  ;;  %v1605_v48 = vld [vmem:[%s2220_s1 + $0x84] ss:$8 sps:$4 sm:$0xff]   ;;  %v1548_v50 = vld [vmem:[%s2220_s1 + $0x1f4] ss:$8 sps:$4 sm:$0xff]   ;;  %v1610_v51 = vld [vmem:[%s2220_s1 + $0x80] ss:$8 sps:$4 sm:$0xff]  }
  0x12   :  { %664 = vmatprep.subr.bf16.mxu1 %v1575_v28  ;;  %v1611_v52 = vld [vmem:[%s2220_s1 + $0x94] ss:$8 sps:$4 sm:$0xff]   ;;  %v1550_v53 = vld [vmem:[%s2220_s1 + $0x1f0] ss:$8 sps:$4 sm:$0xff]   ;;  %v42_v55 = vld [vmem:[%s2221_s0 + $0x48] sm:$0xff] }
  0x13   :  { %710 = vmatpush1.bf16.msra.mxu0 %v1517_v9  ;;  %v35_v54 = vld [vmem:[%s2221_s0 + $0x10] sm:$0xff]  ;;  %v1553_v56 = vld [vmem:[%s2220_s1 + $0x204] ss:$8 sps:$4 sm:$0xff]   ;;  %v1551_v58 = vld [vmem:[%s2220_s1 + $0x200] ss:$8 sps:$4 sm:$0xff]  }
  0x14   :  { %711 = vmatprep.subr.bf16.mxu0 %v1518_v10  ;;  %v1616_v57 = vld [vmem:[%s2220_s1 + $0x90] ss:$8 sps:$4 sm:$0xff]   ;;  %v49_v59 = vpack.c.bf16 %v42_v55, %v35_v54  ;;  %v1617_v60 = vld [vmem:[%s2220_s1 + $0xa4] ss:$8 sps:$4 sm:$0xff]   ;;  %v1556_v63 = vld [vmem:[%s2220_s1 + $0x214] ss:$8 sps:$4 sm:$0xff]  }
  0x15   :  { %665 = vmatpush1.bf16.msra.mxu1 %v1580_v31  ;;  %v38_v61 = vld [vmem:[%s2221_s0 + $0x28] sm:$0xff]  ;;  %v45_v62 = vld [vmem:[%s2221_s0 + $0x60] sm:$0xff]  ;;  %v1623_v2 = vld [vmem:[%s2220_s1 + $0xb4] ss:$8 sps:$4 sm:$0xff]  }
  0x16   :  { %666 = vmatprep.subr.bf16.mxu1 %v1581_v32  ;;  %v52_v0 = vpack.c.bf16 %v45_v62, %v38_v61  ;;  %v1622_v1 = vld [vmem:[%s2220_s1 + $0xa0] ss:$8 sps:$4 sm:$0xff]   ;;  %v1554_v3 = vld [vmem:[%s2220_s1 + $0x210] ss:$8 sps:$4 sm:$0xff]   ;;  %v1561_v4 = vld [vmem:[%s2220_s1 + $0x224] ss:$8 sps:$4 sm:$0xff]  }
  0x17   :  { %712 = vmatpush1.bf16.msra.mxu0 %v1520_v11  ;;  %v34_v5 = vld [vmem:[%s2221_s0 + $0x8] sm:$0xff]  ;;  %v41_v6 = vld [vmem:[%s2221_s0 + $0x40] sm:$0xff]  ;;  %v1628_v7 = vld [vmem:[%s2220_s1 + $0xb0] ss:$8 sps:$4 sm:$0xff]   ;;  %v1690_v61 = vmov 0  }
  0x18   :  { %713 = vmatprep.subr.bf16.mxu0 %v1521_v12  ;;  %v48_v8 = vpack.c.bf16 %v41_v6, %v34_v5  ;;  %v1629_v9 = vld [vmem:[%s2220_s1 + $0xc4] ss:$8 sps:$4 sm:$0xff]   ;;  %v1559_v10 = vld [vmem:[%s2220_s1 + $0x220] ss:$8 sps:$4 sm:$0xff]   ;;  %v1567_v11 = vld [vmem:[%s2220_s1 + $0x234] ss:$8 sps:$4 sm:$0xff]  }
  0x19   :  { %667 = vmatpush1.bf16.msra.mxu1 %v1586_v35  ;;  %v1634_v12 = vld [vmem:[%s2220_s1 + $0xc0] ss:$8 sps:$4 sm:$0xff]   ;;  %v1635_v13 = vld [vmem:[%s2220_s1 + $0xd4] ss:$8 sps:$4 sm:$0xff]   ;;  %v1565_v14 = vld [vmem:[%s2220_s1 + $0x230] ss:$8 sps:$4 sm:$0xff]  }
  0x1a   :  { %668 = vmatprep.subr.bf16.mxu1 %v1587_v36  ;;  %690 = vmatprep.mubr.bf16.mxu1 %v48_v8  ;;  %v1573_v15 = vld [vmem:[%s2220_s1 + $0x244] ss:$8 sps:$4 sm:$0xff]   ;;  %v1579_v18 = vld [vmem:[%s2220_s1 + $0x254] ss:$8 sps:$4 sm:$0xff]   ;;  %v1577_v22 = vld [vmem:[%s2220_s1 + $0x250] ss:$8 sps:$4 sm:$0xff]  }
  0x1b   :  { %714 = vmatpush1.bf16.msra.mxu0 %v1523_v16  ;;  %v1571_v16 = vld [vmem:[%s2220_s1 + $0x240] ss:$8 sps:$4 sm:$0xff]   ;;  %v1647_v21 = vld [vmem:[%s2220_s1 + $0xf4] ss:$8 sps:$4 sm:$0xff]   ;;  %v1649_v24 = vld [vmem:[%s2220_s1 + $0xf0] ss:$8 sps:$4 sm:$0xff]  }
  0x1c   :  { %715 = vmatprep.subr.bf16.mxu0 %v1524_v17  ;;  %v1640_v17 = vld [vmem:[%s2220_s1 + $0xd0] ss:$8 sps:$4 sm:$0xff]   ;;  %v33_v25 = vld [vmem:[%s2221_s0] sm:$0xff]  ;;  %v1652_v32 = vld [vmem:[%s2222_s3 + $0x48] sm:$0xff]   ;;  %v1691_v8 = vmov 0.0  }
  0x1d   :  { %669 = vmatpush1.bf16.msra.mxu1 %v1592_v39  ;;  %v1650_v27 = vld [vmem:[%s2222_s3 + $0x40] sm:$0xff]   ;;  %v1653_v35 = vld [vmem:[%s2222_s3 + $0x8] sm:$0xff]   ;;  %v1654_v36 = vld [vmem:[%s2222_s3 + $0x50] sm:$0xff]  }
  0x1e   :  { %670 = vmatprep.subr.bf16.mxu1 %v1593_v40  ;;  %v1583_v28 = vld [vmem:[%s2220_s1 + $0x260] ss:$8 sps:$4 sm:$0xff]   ;;  %v1655_v39 = vld [vmem:[%s2222_s3 + $0x10] sm:$0xff]   ;;  %v1656_v40 = vld [vmem:[%s2222_s3 + $0x58] sm:$0xff]  }
  0x1f   :  { %716 = vmatpush1.bf16.msra.mxu0 %v1526_v19  ;;  %v1641_v19 = vld [vmem:[%s2220_s1 + $0xe4] ss:$8 sps:$4 sm:$0xff]   ;;  %v1639_v54 = vld [vmem:[%s2220_s1 + $0x2f4] ss:$8 sps:$4 sm:$0xff]   ;;  %v1637_v55 = vld [vmem:[%s2220_s1 + $0x2f0] ss:$8 sps:$4 sm:$0xff]  }
  0x20   :  { %717 = vmatprep.subr.bf16.mxu0 %v1527_v20  ;;  %v1646_v20 = vld [vmem:[%s2220_s1 + $0xe0] ss:$8 sps:$4 sm:$0xff]   ;;  %v39_v62 = vld [vmem:[%s2221_s0 + $0x30] sm:$0xff]  ;;  %v1664_v6 = vld [vmem:[%s2222_s3 + $0x78] sm:$0xff]  }
  0x21   :  { %671 = vmatpush1.bf16.msra.mxu1 %v1598_v43  ;;  %v1651_v31 = vld [vmem:[%s2222_s3] sm:$0xff]   ;;  %v1657_v43 = vld [vmem:[%s2222_s3 + $0x18] sm:$0xff]   ;;  %v1663_v5 = vld [vmem:[%s2222_s3 + $0x30] sm:$0xff]  }
  0x22   :  { %672 = vmatprep.subr.bf16.mxu1 %v1599_v44  ;;  %v1658_v44 = vld [vmem:[%s2222_s3 + $0x60] sm:$0xff]  }
  0x23   :  { %718 = vmatpush1.bf16.msra.mxu0 %v1529_v23  ;;  %v1585_v23 = vld [vmem:[%s2220_s1 + $0x264] ss:$8 sps:$4 sm:$0xff]  }
  0x24   :  { %719 = vmatprep.subr.bf16.mxu0 %v1530_v26  ;;  %v40_v26 = vld [vmem:[%s2221_s0 + $0x38] sm:$0xff] }
  0x25   :  { %673 = vmatpush1.bf16.msra.mxu1 %v1604_v47  ;;  %v1613_v47 = vld [vmem:[%s2220_s1 + $0x2b0] ss:$8 sps:$4 sm:$0xff]  }
  0x26   :  { %674 = vmatprep.subr.bf16.mxu1 %v1605_v48  ;;  %v1621_v48 = vld [vmem:[%s2220_s1 + $0x2c4] ss:$8 sps:$4 sm:$0xff]  }
  0x27   :  { %720 = vmatpush1.bf16.msra.mxu0 %v1532_v29  ;;  %v1591_v29 = vld [vmem:[%s2220_s1 + $0x274] ss:$8 sps:$4 sm:$0xff]  }
  0x28   :  { %721 = vmatprep.subr.bf16.mxu0 %v1533_v30  ;;  %v47_v30 = vpack.c.bf16 %v40_v26, %v33_v25 }
  0x29   :  { %675 = vmatpush1.bf16.msra.mxu1 %v1610_v51  ;;  %v1625_v51 = vld [vmem:[%s2220_s1 + $0x2d0] ss:$8 sps:$4 sm:$0xff]  }
  0x2a   :  { %676 = vmatprep.subr.bf16.mxu1 %v1611_v52  ;;  %v1633_v52 = vld [vmem:[%s2220_s1 + $0x2e4] ss:$8 sps:$4 sm:$0xff]  }
  0x2b   :  { %722 = vmatpush1.bf16.msra.mxu0 %v1535_v33  ;;  %v1589_v33 = vld [vmem:[%s2220_s1 + $0x270] ss:$8 sps:$4 sm:$0xff]  }
  0x2c   :  { %723 = vmatprep.subr.bf16.mxu0 %v1536_v34  ;;  %v1597_v34 = vld [vmem:[%s2220_s1 + $0x284] ss:$8 sps:$4 sm:$0xff]  }
  0x2d   :  { %677 = vmatpush1.bf16.msra.mxu1 %v1616_v57  ;;  %v44_v57 = vld [vmem:[%s2221_s0 + $0x58] sm:$0xff] }
  0x2e   :  { %678 = vmatprep.subr.bf16.mxu1 %v1617_v60  ;;  %v1643_v60 = vld [vmem:[%s2220_s1 + $0x300] ss:$8 sps:$4 sm:$0xff]  }
  0x2f   :  { %724 = vmatpush1.bf16.msra.mxu0 %v1538_v37  ;;  %v1595_v37 = vld [vmem:[%s2220_s1 + $0x280] ss:$8 sps:$4 sm:$0xff]  }
  0x30   :  { %725 = vmatprep.subr.bf16.mxu0 %v1539_v38  ;;  %v1603_v38 = vld [vmem:[%s2220_s1 + $0x294] ss:$8 sps:$4 sm:$0xff]  }
  0x31   :  { %679 = vmatpush1.bf16.msra.mxu1 %v1622_v1  ;;  %v1659_v1 = vld [vmem:[%s2222_s3 + $0x20] sm:$0xff]  }
  0x32   :  { %680 = vmatprep.subr.bf16.mxu1 %v1623_v2  ;;  %v1660_v2 = vld [vmem:[%s2222_s3 + $0x68] sm:$0xff]  }
  0x33   :  { %726 = vmatpush1.bf16.msra.mxu0 %v1541_v41  ;;  %v1601_v41 = vld [vmem:[%s2220_s1 + $0x290] ss:$8 sps:$4 sm:$0xff]  }
  0x34   :  { %727 = vmatprep.subr.bf16.mxu0 %v1542_v42  ;;  %v1609_v42 = vld [vmem:[%s2220_s1 + $0x2a4] ss:$8 sps:$4 sm:$0xff]  }
  0x35   :  { %681 = vmatpush1.bf16.msra.mxu1 %v1628_v7  ;;  %v1665_v7 = vld [vmem:[%s2222_s3 + $0x38] sm:$0xff]  }
  0x36   :  { %682 = vmatprep.subr.bf16.mxu1 %v1629_v9 }
  0x37   :  { %728 = vmatpush1.bf16.msra.mxu0 %v1544_v45  ;;  %v1607_v45 = vld [vmem:[%s2220_s1 + $0x2a0] ss:$8 sps:$4 sm:$0xff]  }
  0x38   :  { %729 = vmatprep.subr.bf16.mxu0 %v1545_v46  ;;  %v1615_v46 = vld [vmem:[%s2220_s1 + $0x2b4] ss:$8 sps:$4 sm:$0xff]  }
  0x39   :  { %683 = vmatpush1.bf16.msra.mxu1 %v1634_v12 }
  0x3a   :  { %684 = vmatprep.subr.bf16.mxu1 %v1635_v13  ;;  %v154_v13 = vlaneseq }
  0x3b   :  { %730 = vmatpush1.bf16.msra.mxu0 %v1547_v49  ;;  %v1619_v49 = vld [vmem:[%s2220_s1 + $0x2c0] ss:$8 sps:$4 sm:$0xff]  }
  0x3c   :  { %731 = vmatprep.subr.bf16.mxu0 %v1548_v50  ;;  %v1627_v50 = vld [vmem:[%s2220_s1 + $0x2d4] ss:$8 sps:$4 sm:$0xff]  }
  0x3d   :  { %685 = vmatpush1.bf16.msra.mxu1 %v1640_v17 }
  0x3e   :  { %686 = vmatprep.subr.bf16.mxu1 %v1641_v19 }
  0x3f   :  { %732 = vmatpush1.bf16.msra.mxu0 %v1550_v53  ;;  %v1631_v53 = vld [vmem:[%s2220_s1 + $0x2e0] ss:$8 sps:$4 sm:$0xff]  }
  0x40   :  { %744 = vmatprep.subr.bf16.mxu0 %v1553_v56  ;;  %v37_v56 = vld [vmem:[%s2221_s0 + $0x20] sm:$0xff] }
  0x41   :  { %687 = vmatpush1.bf16.msra.mxu1 %v1646_v20 }
  0x42   :  { %734 = vmatmul.mubr.bf16.vlgmr.msra.gmra.mrb[0].mxu0 %v49_v59  ;;  %688 = vmatprep.subr.bf16.mxu1 %v1647_v21  ;;  %v51_v59 = vpack.c.bf16 %v44_v57, %v37_v56  ;;  %v1674_v57 = vld [vmem:[%s2225_s7] sm:$0xff]  }
  0x43   :  { %745 = vmatpush1.bf16.msra.mxu0 %v1551_v58  ;;  %776 = vmatprep.mubr.bf16.mxu0 %v52_v0  ;;  %v1645_v58 = vld [vmem:[%s2220_s1 + $0x304] ss:$8 sps:$4 sm:$0xff]  }
  0x44   :  { %746 = vmatprep.subr.bf16.mxu0 %v1556_v63  ;;  %v46_v63 = vld [vmem:[%s2221_s0 + $0x68] sm:$0xff] }
  0x45   :  { %689 = vmatpush1.bf16.msra.mxu1 %v1649_v24  ;;  %v53_v0 = vpack.c.bf16 %v46_v63, %v39_v62  ;;  %v1678_v62 = vld [vmem:[%s2225_s7 + $0x20] sm:$0xff]   ;;  %v1679_v63 = vld [vmem:[%s2225_s7 + $0x28] sm:$0xff]  }
  0x46   :  { %1404 = vmatprep.subr.bf16.mxu1 %v1650_v27 }
  0x47   :  { %747 = vmatpush1.bf16.msra.mxu0 %v1554_v3  ;;  %v1661_v3 = vld [vmem:[%s2222_s3 + $0x28] sm:$0xff]  }
  0x48   :  { %748 = vmatprep.subr.bf16.mxu0 %v1561_v4  ;;  %691 = vmatmul.mubr.bf16.vlgmr.msra.gmra.mrb[0].mxu1 %v47_v30  ;;  %v1662_v4 = vld [vmem:[%s2222_s3 + $0x70] sm:$0xff]  }
  0x49   :  { %1405 = vmatpush3.bf16.msra.mxu1 %v1651_v31 }
  0x4a   :  { %1406 = vmatprep.subr.bf16.mxu1 %v1652_v32 }
  0x4b   :  { %749 = vmatpush1.bf16.msra.mxu0 %v1559_v10 }
  0x4c   :  { %750 = vmatprep.subr.bf16.mxu0 %v1567_v11 }
  0x4d   :  { %1407 = vmatpush3.bf16.msra.mxu1 %v1653_v35 }
  0x4e   :  { %1408 = vmatprep.subr.bf16.mxu1 %v1654_v36 }
  0x4f   :  { %751 = vmatpush1.bf16.msra.mxu0 %v1565_v14  ;;  %v155_v14 = vshrl.u32 %v154_v13, 7 }
  0x50   :  { %752 = vmatprep.subr.bf16.mxu0 %v1573_v15 }
  0x51   :  { %1409 = vmatpush3.bf16.msra.mxu1 %v1655_v39  ;;  %v156_v15 = vsub.s32 0, %v155_v14  ;;  %v160_v17 = vsub.s32 1, %v155_v14  ;;  %v1667_v39 = vld [vmem:[%s2223_s5 + $0x8] sm:$0xff]  }
  0x52   :  { %1410 = vmatprep.subr.bf16.mxu1 %v1656_v40  ;;  %v1668_v40 = vld [vmem:[%s2223_s5 + $0x10] sm:$0xff]  }
  0x53   :  { %753 = vmatpush1.bf16.msra.mxu0 %v1571_v16  ;;  %v152_v16 = vld [vmem:[%s2224_s2] sm:$0x3] }
  0x54   :  { %754 = vmatprep.subr.bf16.mxu0 %v1579_v18  ;;  %v157_v18 = vrot.slane %v152_v16, %v156_v15  ;;  %v161_v19 = vrot.slane %v152_v16, %v160_v17 }
  0x55   :  { %1411 = vmatpush3.bf16.msra.mxu1 %v1657_v43  ;;  %v1671_v43 = vld [vmem:[%s2223_s5 + $0x28] sm:$0xff]  }
  0x56   :  { %1412 = vmatprep.subr.bf16.mxu1 %v1658_v44  ;;  %v1672_v44 = vld [vmem:[%s2223_s5 + $0x30] sm:$0xff]  }
  0x57   :  { %755 = vmatpush1.bf16.msra.mxu0 %v1577_v22 }
  0x58   :  { %756 = vmatprep.subr.bf16.mxu0 %v1585_v23 }
  0x59   :  { %1413 = vmatpush3.bf16.msra.mxu1 %v1659_v1  ;;  %v1681_v1 = vld [vmem:[%s2225_s7 + $0x38] sm:$0xff]  }
  0x5a   :  { %1414 = vmatprep.subr.bf16.mxu1 %v1660_v2  ;;  %v1386_v2 = vld [vmem:[%s2227_s6] ss:$0 sm:$0xff] }
  0x5b   :  { %757 = vmatpush1.bf16.msra.mxu0 %v1583_v28 }
  0x5c   :  { %758 = vmatprep.subr.bf16.mxu0 %v1591_v29 }
  0x5d   :  { %1415 = vmatpush3.bf16.msra.mxu1 %v1661_v3 }
  0x5e   :  { %1416 = vmatprep.subr.bf16.mxu1 %v1662_v4 }
  0x5f   :  { %759 = vmatpush1.bf16.msra.mxu0 %v1589_v33 }
  0x60   :  { %760 = vmatprep.subr.bf16.mxu0 %v1597_v34 }
  0x61   :  { %1417 = vmatpush3.bf16.msra.mxu1 %v1663_v5 }
  0x62   :  { %1418 = vmatprep.subr.bf16.mxu1 %v1664_v6 }
  0x63   :  { %761 = vmatpush1.bf16.msra.mxu0 %v1595_v37 }
  0x64   :  { %762 = vmatprep.subr.bf16.mxu0 %v1603_v38  ;;  %v1666_v38 = vld [vmem:[%s2223_s5] sm:$0xff]  }
  0x65   :  { %1419 = vmatpush3.bf16.msra.mxu1 %v1665_v7 }
  0x66   :  { %1444 = vmatprep.subr.bf16.mxu1 %v1691_v8 }
  0x67   :  { %763 = vmatpush1.bf16.msra.mxu0 %v1601_v41  ;;  %v1669_v41 = vld [vmem:[%s2223_s5 + $0x18] sm:$0xff]  }
  0x68   :  { %764 = vmatprep.subr.bf16.mxu0 %v1609_v42  ;;  %v1670_v42 = vld [vmem:[%s2223_s5 + $0x20] sm:$0xff]  }
  0x6b   :  { %765 = vmatpush1.bf16.msra.mxu0 %v1607_v45  ;;  %v1673_v45 = vld [vmem:[%s2223_s5 + $0x38] sm:$0xff]  }
  0x6c   :  { %766 = vmatprep.subr.bf16.mxu0 %v1615_v46 }
  0x6f   :  { %767 = vmatpush1.bf16.msra.mxu0 %v1613_v47  ;;  %v1369_v47 = vld [vmem:[%s2226_s4] ss:$0 sm:$0xff] }
  0x70   :  { %768 = vmatprep.subr.bf16.mxu0 %v1621_v48 }
  0x73   :  { %769 = vmatpush1.bf16.msra.mxu0 %v1619_v49 }
  0x74   :  { %770 = vmatprep.subr.bf16.mxu0 %v1627_v50 }
  0x77   :  { %771 = vmatpush1.bf16.msra.mxu0 %v1625_v51 }
  0x78   :  { %772 = vmatprep.subr.bf16.mxu0 %v1633_v52 }
  0x7b   :  { %773 = vmatpush1.bf16.msra.mxu0 %v1631_v53 }
  0x7c   :  { %774 = vmatprep.subr.bf16.mxu0 %v1639_v54 }
  0x7f   :  { %775 = vmatpush1.bf16.msra.mxu0 %v1637_v55 }
  0x80   :  { %787 = vmatprep.subr.bf16.mxu0 %v1645_v58 }
  0x82   :  { %777 = vmatmul.mubr.bf16.vlgmr.msra.gmra.mrb[0].mxu0 %v51_v59  ;;  %v1675_v59 = vld [vmem:[%s2225_s7 + $0x8] sm:$0xff]  }
  0x83   :  { %788 = vmatpush1.bf16.msra.mxu0 %v1643_v60  ;;  %819 = vmatprep.mubr.bf16.mxu0 %v1690_v61  ;;  %v1676_v60 = vld [vmem:[%s2225_s7 + $0x10] sm:$0xff]   ;;  %v1677_v61 = vld [vmem:[%s2225_s7 + $0x18] sm:$0xff]  }
  0x8e   :  { %1368 = vmatmul.mubr.msk.bf16.vlgmr.msra.gmra.mrb[0].mxu0 %vm654_vm0, %v53_v0  ;;  %v1680_v0 = vld [vmem:[%s2225_s7 + $0x30] sm:$0xff]  }
 0x11b   :  { %v692_v9 = vpop.f32.mrb[0].mxu1 }
 0x11c   :  { %v694_v10 = vpop.f32.mrb[1].mxu1  ;;  %v693_v20 = vadd.f32 %v692_v9, %v157_v18 }
 0x11d   :  { %v696_v11 = vpop.f32.mrb[2].mxu1  ;;  %v695_v21 = vadd.f32 %v694_v10, %v161_v19 }
 0x11e   :  { %v698_v12 = vpop.f32.mrb[3].mxu1  ;;  %v697_v23 = vadd.f32 %v696_v11, %v157_v18 }
 0x11f   :  { %v699_v26 = vadd.f32 %v698_v12, %v161_v19 }
 0x161   :  { %v821_v22 = vpop.f32.mrb[0].mxu0 }
 0x162   :  { %v1485_v24 = vadd.f32 %v821_v22, %v693_v20  ;;  %v823_v25 = vpop.f32.mrb[1].mxu0 }
 0x163   :  { %v1487_v27 = vadd.f32 %v823_v25, %v695_v21  ;;  %v825_v28 = vpop.f32.mrb[2].mxu0 }
 0x164   :  { %v1489_v29 = vadd.f32 %v825_v28, %v697_v23  ;;  %v827_v30 = vpop.f32.mrb[3].mxu0  ;;  %v830_v32 = vmax.f32 %v1485_v24, 0.0 }
 0x165   :  { %v1491_v31 = vadd.f32 %v827_v30, %v699_v26  ;;  %v831_v34 = vmax.f32 %v1487_v27, 0.0 }
 0x166   :  { %v832_v33 = vmax.f32 %v1489_v29, 0.0 }
 0x167   :  { %v833_v35 = vmax.f32 %v1491_v31, 0.0 }
 0x168   :  { %v834_v36 = vpack.c.bf16 %v832_v33, %v830_v32 }
 0x169   :  { %v835_v37 = vpack.c.bf16 %v833_v35, %v831_v34 }
 0x16b   :  { %1003 = vmatprep.mubr.bf16.mxu1 %v835_v37 }
 0x16c   :  { %1004 = vmatmul.mubr.bf16.vlgmr.msra.gmra.mrb[4].mxu1 %v834_v36 }
 0x16d   :  { %1445 = vmatpush3.bf16.msra.mxu1 %v1666_v38  ;;  %1460 = vmatprep.mubr.msk.bf16.mxu1 %vm1692_vm1, %v1691_v8 }
 0x16e   :  { %1446 = vmatprep.subr.bf16.mxu1 %v1691_v8 }
 0x171   :  { %1447 = vmatpush3.bf16.msra.mxu1 %v1667_v39 }
 0x172   :  { %1448 = vmatprep.subr.bf16.mxu1 %v1691_v8 }
 0x175   :  { %1449 = vmatpush3.bf16.msra.mxu1 %v1668_v40 }
 0x176   :  { %1450 = vmatprep.subr.bf16.mxu1 %v1691_v8 }
 0x179   :  { %1451 = vmatpush3.bf16.msra.mxu1 %v1669_v41 }
 0x17a   :  { %1452 = vmatprep.subr.bf16.mxu1 %v1691_v8 }
 0x17d   :  { %1453 = vmatpush3.bf16.msra.mxu1 %v1670_v42 }
 0x17e   :  { %1454 = vmatprep.subr.bf16.mxu1 %v1691_v8 }
 0x181   :  { %1455 = vmatpush3.bf16.msra.mxu1 %v1671_v43 }
 0x182   :  { %1456 = vmatprep.subr.bf16.mxu1 %v1691_v8 }
 0x185   :  { %1457 = vmatpush3.bf16.msra.mxu1 %v1672_v44 }
 0x186   :  { %1458 = vmatprep.subr.bf16.mxu1 %v1691_v8 }
 0x189   :  { %1459 = vmatpush3.bf16.msra.mxu1 %v1673_v45 }
 0x18a   :  { %1464 = vmatprep.subr.bf16.mxu1 %v1691_v8 }
 0x23f   :  { %v1420_v46 = vpop.f32.mrb[4].mxu1 }
 0x240   :  { %v1421_v48 = vpop.f32.mrb[5].mxu1 }
 0x241   :  { %v1422_v49 = vadd.f32 %v1421_v48, %v1420_v46  ;;  %v1423_v50 = vpop.f32.mrb[6].mxu1 }
 0x242   :  { %v1424_v51 = vpop.f32.mrb[7].mxu1 }
 0x243   :  { %v1006_v52 = vadd.f32 %v1422_v49, %v1369_v47  ;;  %v1425_v53 = vadd.f32 %v1424_v51, %v1423_v50 }
 0x245   :  { %v1009_v54 = vadd.f32 %v1425_v53, %v1369_v47  ;;  %v1012_v55 = vmax.f32 %v1006_v52, 0.0 }
 0x247   :  { %v1013_v56 = vmax.f32 %v1009_v54, 0.0 }
 0x249   :  { %v1014_v58 = vpack.c.bf16 %v1013_v56, %v1012_v55 }
 0x24b   :  { %1461 = vmatmul.mubr.bf16.vlgmr.msra.gmra.mrb[8].mxu1 %v1014_v58 }
 0x24c   :  { %1465 = vmatpush3.bf16.msra.mxu1 %v1674_v57  ;;  %1480 = vmatprep.mubr.msk.bf16.mxu1 %vm1692_vm1, %v1691_v8 }
 0x24d   :  { %1466 = vmatprep.subr.bf16.mxu1 %v1691_v8 }
 0x250   :  { %1467 = vmatpush3.bf16.msra.mxu1 %v1675_v59 }
 0x251   :  { %1468 = vmatprep.subr.bf16.mxu1 %v1691_v8 }
 0x254   :  { %1469 = vmatpush3.bf16.msra.mxu1 %v1676_v60 }
 0x255   :  { %1470 = vmatprep.subr.bf16.mxu1 %v1691_v8 }
 0x258   :  { %1471 = vmatpush3.bf16.msra.mxu1 %v1677_v61 }
 0x259   :  { %1472 = vmatprep.subr.bf16.mxu1 %v1691_v8 }
 0x25c   :  { %1473 = vmatpush3.bf16.msra.mxu1 %v1678_v62 }
 0x25d   :  { %1474 = vmatprep.subr.bf16.mxu1 %v1691_v8 }
 0x260   :  { %1475 = vmatpush3.bf16.msra.mxu1 %v1679_v63 }
 0x261   :  { %1476 = vmatprep.subr.bf16.mxu1 %v1691_v8 }
 0x264   :  { %1477 = vmatpush3.bf16.msra.mxu1 %v1680_v0 }
 0x265   :  { %1478 = vmatprep.subr.bf16.mxu1 %v1691_v8  ;;  %v1395_v8 = vld [vmem:[%s2228_s8] ss:$0 sm:$0xff] }
 0x268   :  { %1479 = vmatpush3.bf16.msra.mxu1 %v1681_v1 }
 0x31e   :  { %v1120_v3 = vpop.f32.mrb[8].mxu1 }
 0x31f   :  { %v1121_v4 = vadd.f32 %v1386_v2, %v1120_v3  ;;  %v1462_v5 = vpop.f32.mrb[9].mxu1 }
 0x320   :  { %v1123_v6 = vpop.f32.mrb[10].mxu1 }
 0x321   :  { %v1124_v7 = vadd.f32 %v1386_v2, %v1123_v6  ;;  %v1463_v9 = vpop.f32.mrb[11].mxu1  ;;  %v1127_v10 = vmax.f32 %v1121_v4, 0.0 }
 0x323   :  { %v1128_v11 = vmax.f32 %v1124_v7, 0.0 }
 0x325   :  { %v1129_v12 = vpack.c.bf16 %v1128_v11, %v1127_v10 }
 0x327   :  { %1481 = vmatmul.mubr.bf16.vlgmr.msra.gmra.mrb[12].mxu1 %v1129_v12 }
 0x3fa   :  { %v1235_v13 = vpop.f32.mrb[12].mxu1 }
 0x3fb   :  { %v1236_v14 = vadd.f32 %v1395_v8, %v1235_v13  ;;  %v1482_v15 = vpop.f32.mrb[13].mxu1 }
 0x3fc   :  { %v1238_v16 = vpop.f32.mrb[14].mxu1 }
 0x3fd   :  { %v1239_v17 = vadd.f32 %v1395_v8, %v1238_v16  ;;  %v1483_v18 = vpop.f32.mrb[15].mxu1  ;;  %v1242_v19 = vsel %vm654_vm0, %v1236_v14, -inf }
 0x3fe   :  { %1243 = vmax.xlane.f32.xlu0 %v1242_v19 }
 0x3ff   :  { %v1245_v20 = vsel %vm654_vm0, %v1239_v17, -inf }
 0x402   :  { %1246 = vmax.xlane.f32.xlu0 %v1245_v20 }
 0x48b   :  { %v1244_v21 = vpop.xlane.xlu0 %1243 }
 0x48c   :  { %v1248_v22 = vsub.f32 %v1236_v14, %v1244_v21 }
 0x48e   :  { %v1250_v23 = vmul.f32 1.442695, %v1248_v22 }
 0x48f   :  { %v1247_v24 = vpop.xlane.xlu0 %1246 }
 0x490   :  { %1682 = vpow2.f32 %v1250_v23  ;;  %v1249_v25 = vsub.f32 %v1239_v17, %v1247_v24 }
 0x492   :  { %v1252_v26 = vmul.f32 1.442695, %v1249_v25 }
 0x494   :  { %1684 = vpow2.f32 %v1252_v26 }
 0x49a   :  { %v1683_v27 = vpop.eup %1682 }
 0x49b   :  { %v1254_v28 = vsel %vm654_vm0, %v1683_v27, 0.0 }
 0x49c   :  { %1255 = vadd.xlane.f32.xlu1 %v1254_v28 }
 0x49e   :  { %v1685_v29 = vpop.eup %1684 }
 0x49f   :  { %v1257_v30 = vsel %vm654_vm0, %v1685_v29, 0.0 }
 0x4a0   :  { %1258 = vadd.xlane.f32.xlu1 %v1257_v30 }
 0x529   :  { %v1256_v31 = vpop.xlane.xlu1 %1255 }
 0x52a   :  { %1686 = vrcp.f32 %v1256_v31 }
 0x52d   :  { %v1259_v32 = vpop.xlane.xlu1 %1258 }
 0x52e   :  { %1688 = vrcp.f32 %v1259_v32 }
 0x534   :  { %v1687_v33 = vpop.eup %1686 }
 0x535   :  { %v1262_v34 = vmul.f32 %v1687_v33, %v1683_v27 }
 0x537   :  { %1264 = vst.msk [vmem:[%s2229_s9] sm:$0xff] %vm654_vm0, %v1262_v34 }
 0x538   :  { %v1689_v35 = vpop.eup %1688 }
 0x539   :  { %v1263_v36 = vmul.f32 %v1689_v35, %v1685_v29 }
 0x53b   :  { %1265 = vst.msk [vmem:[%s2229_s9 + $0x8] sm:$0xff] %vm654_vm0, %v1263_v36 }

</bundles_post_ra>
